<compile_context>
chip_gen: v5e
topology: v5e:2x2
jax: 0.10.0
libtpu: 0.0.40
codegen_flags: <defaults>
</compile_context>

<pallas_src>
import jax
import jax.numpy as jnp
from jax.experimental import pallas as pl
from jax.experimental.pallas import tpu as pltpu

EYE_W, EYE_H = 22, 22
IMG_SIZE = 112

# PyTorch F.pad(left, right, top, bottom) on last two dims -> placement offsets:
L_LEFT = 38 - EYE_W // 2 - 1                 # 26  (left eye column start)
L_TOP = 54 - EYE_H // 2 - 1                  # 42  (left eye row start)
R_LEFT = IMG_SIZE - (38 + EYE_W // 2 - 1)    # 64  (right eye column start)
R_TOP = 54 - EYE_H // 2 - 1                  # 42  (right eye row start)

# 128 planes -> ~7.3 MiB per (lane-padded) output buffer, ~21 MiB total with
# double buffering and both eye inputs; fits the explicit 32 MiB scoped-VMEM
# limit below on v5e/v6e/v7x.
MAX_PLANES_PER_BLOCK = 128
VMEM_LIMIT_BYTES = 32 * 1024 * 1024


def _local_fuser_kernel(left_ref, right_ref, out_ref):
    # Block = B (n,c)-planes: left/right (B, 22, 22), out (B, 112, 112).
    # One full-block lane-dense zero store, then two disjoint patch stores.
    # All stores are VMEM-only; the HBM writeback is a single contiguous
    # block DMA per grid step.
    out_ref[...] = jnp.zeros(out_ref.shape, out_ref.dtype)
    out_ref[:, L_TOP:L_TOP + EYE_H, L_LEFT:L_LEFT + EYE_W] = left_ref[...]
    out_ref[:, L_TOP:L_TOP + EYE_H, R_LEFT:R_LEFT + EYE_W] = right_ref[...]


def _pick_plane_block(nc):
    """Plane block size: cap at 128, force an even (>=2) step count so both
    v7x TensorCores get work and the last block isn't lonely."""
    nsteps = max(2, pl.cdiv(nc, MAX_PLANES_PER_BLOCK))
    nsteps += nsteps % 2                     # even number of grid steps
    b = max(1, pl.cdiv(nc, nsteps))
    return b


def local_fuser(f_left_eye, f_right_eye):
    assert f_left_eye.shape == f_right_eye.shape
    assert f_left_eye.dtype == f_right_eye.dtype
    N, C, H, W = f_left_eye.shape
    assert (H, W) == (EYE_H, EYE_W), "expected 22x22 eye feature maps"

    # Fuse N and C into one plane axis; the reshapes are free for NCHW.
    NC = N * C
    lhs = f_left_eye.reshape(NC, EYE_H, EYE_W)
    rhs = f_right_eye.reshape(NC, EYE_H, EYE_W)

    B = _pick_plane_block(NC)
    grid = (pl.cdiv(NC, B),)

    eye_spec = pl.BlockSpec((B, EYE_H, EYE_W), lambda i: (i, 0, 0))
    out_spec = pl.BlockSpec((B, IMG_SIZE, IMG_SIZE), lambda i: (i, 0, 0))

    out = pl.pallas_call(
        _local_fuser_kernel,
        out_shape=jax.ShapeDtypeStruct((NC, IMG_SIZE, IMG_SIZE),
                                       f_left_eye.dtype),
        grid=grid,
        in_specs=[eye_spec, eye_spec],
        out_specs=out_spec,
        compiler_params=pltpu.CompilerParams(
            dimension_semantics=("parallel",),
            vmem_limit_bytes=VMEM_LIMIT_BYTES),
    )(lhs, rhs)

    return out.reshape(N, C, IMG_SIZE, IMG_SIZE)


def _reference(f_left_eye, f_right_eye):
    # Pure-JAX reference mirroring torch.nn.functional.pad semantics.
    lp = jnp.pad(
        f_left_eye,
        ((0, 0), (0, 0),
         (L_TOP, IMG_SIZE - (L_TOP + EYE_H)),
         (L_LEFT, IMG_SIZE - (L_LEFT + EYE_W))))
    rp = jnp.pad(
        f_right_eye,
        ((0, 0), (0, 0),
         (R_TOP, IMG_SIZE - (R_TOP + EYE_H)),
         (R_LEFT, IMG_SIZE - (R_LEFT + EYE_W))))
    return lp + rp


if __name__ == "__main__":
    key = jax.random.PRNGKey(0)
    k1, k2 = jax.random.split(key)
    N, C = 2, 4
    f_left_eye = jax.random.normal(k1, (N, C, EYE_H, EYE_W), dtype=jnp.float32)
    f_right_eye = jax.random.normal(k2, (N, C, EYE_H, EYE_W), dtype=jnp.float32)

    out = jax.block_until_ready(local_fuser(f_left_eye, f_right_eye))
    ref = _reference(f_left_eye, f_right_eye)

    assert out.shape == (N, C, IMG_SIZE, IMG_SIZE)
    assert jnp.allclose(out, ref, atol=0.0, rtol=0.0), "mismatch vs reference"
    print("KERNEL_OK")
</pallas_src>

<mosaic_0001>
module attributes {stable_mosaic.version = 11 : i64} {
  func.func @_local_fuser_kernel(%arg0: i32, %arg1: memref<4x22x22xf32, #tpu.memory_space<vmem>>, %arg2: memref<4x22x22xf32, #tpu.memory_space<vmem>>, %arg3: memref<4x112x112xf32, #tpu.memory_space<vmem>>) attributes {dimension_semantics = [#tpu.dimension_semantics<parallel>], iteration_bounds = array<i64: 2>, scalar_prefetch = 0 : i64, scratch_operands = 0 : i64, tpu.core_type = #tpu.core_type<tc>, window_params = [{transform_indices = @transform_0, window_bounds = array<i64: 4, 22, 22>}, {transform_indices = @transform_1, window_bounds = array<i64: 4, 22, 22>}, {transform_indices = @transform_2, window_bounds = array<i64: 4, 112, 112>}]} {
    %cst = arith.constant 0.000000e+00 : f32
    %0 = vector.broadcast %cst : f32 to vector<4x112x112xf32>
    %c0 = arith.constant 0 : index
    %c0_0 = arith.constant 0 : index
    %c0_1 = arith.constant 0 : index
    %1 = vector.load %arg3[%c0, %c0_0, %c0_1] : memref<4x112x112xf32, #tpu.memory_space<vmem>>, vector<4x112x112xf32>
    tpu.vector_store %arg3[%c0, %c0_0, %c0_1], %0 {strides = array<i32>} : memref<4x112x112xf32, #tpu.memory_space<vmem>>, vector<4x112x112xf32>,
    %c0_2 = arith.constant 0 : index
    %c0_3 = arith.constant 0 : index
    %c0_4 = arith.constant 0 : index
    %2 = vector.load %arg1[%c0_2, %c0_3, %c0_4] : memref<4x22x22xf32, #tpu.memory_space<vmem>>, vector<4x22x22xf32>
    %c0_5 = arith.constant 0 : index
    %c42 = arith.constant 42 : index
    %c26 = arith.constant 26 : index
    %3 = vector.load %arg3[%c0_5, %c42, %c26] : memref<4x112x112xf32, #tpu.memory_space<vmem>>, vector<4x22x22xf32>
    tpu.vector_store %arg3[%c0_5, %c42, %c26], %2 {strides = array<i32>} : memref<4x112x112xf32, #tpu.memory_space<vmem>>, vector<4x22x22xf32>,
    %c0_6 = arith.constant 0 : index
    %c0_7 = arith.constant 0 : index
    %c0_8 = arith.constant 0 : index
    %4 = vector.load %arg2[%c0_6, %c0_7, %c0_8] : memref<4x22x22xf32, #tpu.memory_space<vmem>>, vector<4x22x22xf32>
    %c0_9 = arith.constant 0 : index
    %c42_10 = arith.constant 42 : index
    %c64 = arith.constant 64 : index
    %5 = vector.load %arg3[%c0_9, %c42_10, %c64] : memref<4x112x112xf32, #tpu.memory_space<vmem>>, vector<4x22x22xf32>
    tpu.vector_store %arg3[%c0_9, %c42_10, %c64], %4 {strides = array<i32>} : memref<4x112x112xf32, #tpu.memory_space<vmem>>, vector<4x22x22xf32>,
    return
  }
  func.func @transform_0(%arg0: i32) -> (i32, i32, i32) {
    %c0_i32 = arith.constant 0 : i32
    %c0_i32_0 = arith.constant 0 : i32
    %c0_i32_1 = arith.constant 0 : i32
    return %arg0, %c0_i32, %c0_i32_0 : i32, i32, i32
  }
  func.func @transform_1(%arg0: i32) -> (i32, i32, i32) {
    %c0_i32 = arith.constant 0 : i32
    %c0_i32_0 = arith.constant 0 : i32
    %c0_i32_1 = arith.constant 0 : i32
    return %arg0, %c0_i32, %c0_i32_0 : i32, i32, i32
  }
  func.func @transform_2(%arg0: i32) -> (i32, i32, i32) {
    %c0_i32 = arith.constant 0 : i32
    %c0_i32_0 = arith.constant 0 : i32
    %c0_i32_1 = arith.constant 0 : i32
    return %arg0, %c0_i32, %c0_i32_0 : i32, i32, i32
  }
}

</mosaic_0001>

<bundles_post_ra>
// kernel: tpu_custom_call.1
= control target key start
LH: loop header
LB: loop body
LE: loop exit
PB: predicated region body
PF: predicated region fallthrough
CT: control target
= control target key end

     0   :  { %7 = vsyncpa [#allocation3], 0  ;;  %s948_s0 = inlined_call_operand.vmem [shape: f32[8,22,22], index: 0, kind: input, shape index: {}]   ;;  %s949_s1 = inlined_call_operand.vmem [shape: f32[8,22,22], index: 1, kind: input, shape index: {}]   ;;  %s950_s2 = inlined_call_operand.hbm [shape: f32[8,112,112], index: 2, kind: output, shape index: {}]  }
   0x1   :  { %9 = vsyncpa [#allocation3 + $0x1], 0  ;;  %s613_s9 = smov 0   ;;  %s615_s10 = smov 0  }
   0x2   :  { %s617_s11 = smov 0   ;;  %s619_s12 = smov 0  }
   0x3 LB: > { %s634_s13 = sadd.s32 4294967295, %s591_s12   ;;  %s469_s14 = sadd.s32 4294967294, %s591_s12   ;;  %s591_s12 = sphi %s619_s12, %s956_s12   ;;  %s587_s11 = sphi %s617_s11, %s955_s11   ;;  %s583_s10 = sphi %s615_s10, %s954_s10   ;;  %s579_s9 = sphi %s613_s9, %s953_s9  }
   0x4   : > { %s638_s15 = sadd.s32 1, %s591_s12   ;;  %s74_s16 = sadd.s32 1, %s587_s11 }
   0x5   : > { %s71_s17 = ssub.s32 %s591_s12, %s638_s15  ;;  %p84_p0 = scmp.ne.s32.totalorder %s587_s11, %s583_s10 }
   0x6   : > { %p72_p1 = scmp.eq.s32.totalorder %s71_s17, 0  ;;  %p85_p2 = scmp.eq.s32.totalorder %s634_s13, 1 }
   0x7   : > { %p90_p3 = scmp.ne.s32.totalorder %s583_s10, %s579_s9  ;;  %p91_p4 = scmp.eq.s32.totalorder %s469_s14, 1 }
   0x8   : > { %s649_s18 = scalar_select %p72_p1, %s587_s11, %s74_s16  }
   0x9   : > { %p651_p5 = por %p85_p2, %p84_p0  ;;  %p655_p6 = por %p91_p4, %p90_p3 }
   0xa   : > { %p472_p7 = scmp.ge.s32.totalorder %s591_s12, 1  ;;  %p129_p8 = scmp.lt.s32.totalorder %s591_s12, 3 }
   0xc   : > { %p130_p9 = pnand %p472_p7, %p129_p8 }
   0xd   : > { %s473_s21 = sshll.u32 (!%p130_p9), %s634_s13, 2  ;;  %s593_s26 = smov (!%p130_p9), 26  }
   0xe   : > { %133 = sbr.rel (%p130_p9) target bundleno = 200 (0xc8), region = 28  ;;  %p159_p10 = scmp.lt.s32.totalorder (!%p130_p9), %s473_s21, 7 }
   0xf   : > { %s155_s27 = sand.u32 (!%p130_p9), 1, %s583_s10   ;;  %s595_s5 = smov (!%p130_p9), 64  }
  0x10   : > { %s482_s28 = smul.u32 (!%p130_p9), 448, %s155_s27 }
  0x11   : > { %s484_s6 = smul.u32 (!%p130_p9), 448, %s634_s13  ;;  %s379_s13 = scalar_lea.sflag (!%p130_p9), [#allocation3], %s155_s27 }
  0x12   : > { %s676_s4 = scalar_lea.vmem (!%p130_p9), [#allocation2], %s482_s28 }
  0x13   : > { %s958_s21 = smov (!%p159_p10, %s473_s21), 7  ;;  %vm173_vm0 = vcmask 916480   ;;  %v594_v12 = vmov 0.0   ;;  %vm290_vm1 = vcmask 392400   ;;  %vm293_vm2 = vcmask 390352   ;;  %s391_s14 = scalar_lea.hbm %s950_s2, %s484_s6 }
  0x14   : > { %s483_s22 = smul.u32 24, %s958_s21  ;;  %194 = vst.msk [vmem:[%s676_s4 + $0xa0] sm:$0xff] %vm173_vm0, %v594_v12  ;;  %vm367_vm3 = vcmask 701952   ;;  %vm364_vm4 = vcmask 704000   ;;  %s392_s16 = sshll.u32 %s676_s4, 4  ;;  %s393_s16 = int_to_ptr.vmem [resolvable:$true] %s392_s16 }
  0x15   : > { %195 = vst.msk [vmem:[%s676_s4 + $0xa8] sm:$0xff] %vm173_vm0, %v594_v12  ;;  %s394_s17 = sshll.u32 %s391_s14, 4  ;;  %s395_s17 = int_to_ptr.hbm [resolvable:$true] %s394_s17 }
  0x16   : > { %s163_s25 = scalar_lea.vmem %s948_s0, %s483_s22  ;;  %s674_s3 = scalar_lea.vmem %s949_s1, %s483_s22  ;;  %174 = vst.msk [vmem:[%s676_s4] sm:$0xff] %vm173_vm0, %v594_v12 }
  0x17   : > { %v232_v0 = vld [vmem:[%s163_s25 + $0x10] sm:$0x3f]  ;;  %v230_v1 = vld [vmem:[%s163_s25] sm:$0xff]  ;;  %v233_v3 = vld [vmem:[%s163_s25 + $0x18] sm:$0xff]  ;;  %175 = vst.msk [vmem:[%s676_s4 + $0x8] sm:$0xff] %vm173_vm0, %v594_v12  ;;  %s543_s21 = sshra.s32 %s395_s17, 4  ;;  %s544_s21 = int_to_ptr.hbm [resolvable:$true] %s543_s21 }
  0x18   : > { %258 = vrot.lane.b32.xlu1 %v232_v0, %s593_s26  ;;  %254 = vrot.lane.b32.xlu0 %v230_v1, %s593_s26  ;;  %v234_v2 = vld [vmem:[%s163_s25 + $0x20] sm:$0xff]  ;;  %v231_v4 = vld [vmem:[%s163_s25 + $0x8] sm:$0xff]  ;;  %s545_s22 = scalar_lea.hbm %s544_s21, 448  ;;  %p550_p0 = scmp.lt.s32.totalorder %s544_s21, %s950_s2 }
  0x19   : > { %262 = vrot.lane.b32.xlu2 %v234_v2, %s593_s26  ;;  %v235_v5 = vld [vmem:[%s163_s25 + $0x28] sm:$0x3f]  ;;  %v237_v6 = vld [vmem:[%s163_s25 + $0x38] sm:$0xff]  ;;  %v236_v7 = vld [vmem:[%s163_s25 + $0x30] sm:$0xff]  ;;  %p546_p11 = scmp.ne.s32.totalorder %s544_s21, %s545_s22 }
  0x1a   : > { %v238_v8 = vld [vmem:[%s163_s25 + $0x40] sm:$0x3f]  ;;  %v240_v9 = vld [vmem:[%s163_s25 + $0x50] sm:$0xff]  ;;  %v239_v10 = vld [vmem:[%s163_s25 + $0x48] sm:$0xff]  ;;  %176 = vst.msk [vmem:[%s676_s4 + $0x10] sm:$0xff] %vm173_vm0, %v594_v12 }
  0x1b   : > { %v241_v11 = vld [vmem:[%s163_s25 + $0x58] sm:$0x3f]  ;;  %v305_v13 = vld [vmem:[%s674_s3 + $0x8] sm:$0xff]  ;;  %v304_v14 = vld [vmem:[%s674_s3] sm:$0xff]  ;;  %177 = vst.msk [vmem:[%s676_s4 + $0x18] sm:$0xff] %vm173_vm0, %v594_v12  ;;  %p547_p12 = pnand %p546_p11, %p651_p5  ;;  %s549_s25 = scalar_lea.hbm %s950_s2, 896 }
  0x1c   : > { %v306_v15 = vld [vmem:[%s674_s3 + $0x10] sm:$0x3f]  ;;  %178 = vst.msk [vmem:[%s676_s4 + $0x20] sm:$0xff] %vm173_vm0, %v594_v12  ;;  %v308_v16 = vld [vmem:[%s674_s3 + $0x20] sm:$0xff]  ;;  %v307_v17 = vld [vmem:[%s674_s3 + $0x18] sm:$0xff]  ;;  %p551_p1 = scmp.lt.s32.totalorder %s549_s25, %s545_s22 }
  0x1d   : > { %179 = vst.msk [vmem:[%s676_s4 + $0x28] sm:$0xff] %vm173_vm0, %v594_v12  ;;  %v309_v18 = vld [vmem:[%s674_s3 + $0x28] sm:$0x3f]  ;;  %v311_v19 = vld [vmem:[%s674_s3 + $0x38] sm:$0xff]  ;;  %v310_v20 = vld [vmem:[%s674_s3 + $0x30] sm:$0xff]  ;;  %p548_p13 = pneg %p547_p12 }
  0x1e   : > { %180 = vst.msk [vmem:[%s676_s4 + $0x30] sm:$0xff] %vm173_vm0, %v594_v12  ;;  %v312_v21 = vld [vmem:[%s674_s3 + $0x40] sm:$0x3f]  ;;  %v314_v22 = vld [vmem:[%s674_s3 + $0x50] sm:$0xff]  ;;  %v313_v23 = vld [vmem:[%s674_s3 + $0x48] sm:$0xff]  ;;  %p552_p2 = por %p551_p1, %p550_p0 }
  0x1f   : > { %181 = vst.msk [vmem:[%s676_s4 + $0x38] sm:$0xff] %vm173_vm0, %v594_v12  ;;  %v315_v24 = vld [vmem:[%s674_s3 + $0x58] sm:$0x3f] }
  0x20   : > { %260 = vrot.lane.b32.xlu1 %v233_v3, %s593_s26  ;;  %256 = vrot.lane.b32.xlu0 %v231_v4, %s593_s26  ;;  %182 = vst.msk [vmem:[%s676_s4 + $0x40] sm:$0xff] %vm173_vm0, %v594_v12  ;;  %p553_p3 = pnand %p552_p2, %p548_p13 }
  0x21   : > { %264 = vrot.lane.b32.xlu2 %v235_v5, %s593_s26  ;;  %183 = vst.msk [vmem:[%s676_s4 + $0x48] sm:$0xff] %vm173_vm0, %v594_v12 }
  0x22   : > { %184 = vst.msk [vmem:[%s676_s4 + $0x50] sm:$0xff] %vm173_vm0, %v594_v12 }
  0x23   : > { %185 = vst.msk [vmem:[%s676_s4 + $0x58] sm:$0xff] %vm173_vm0, %v594_v12 }
  0x24   : > { %186 = vst.msk [vmem:[%s676_s4 + $0x60] sm:$0xff] %vm173_vm0, %v594_v12 }
  0x25   : > { %187 = vst.msk [vmem:[%s676_s4 + $0x68] sm:$0xff] %vm173_vm0, %v594_v12 }
  0x26   : > { %188 = vst.msk [vmem:[%s676_s4 + $0x70] sm:$0xff] %vm173_vm0, %v594_v12 }
  0x27   : > { %189 = vst.msk [vmem:[%s676_s4 + $0x78] sm:$0xff] %vm173_vm0, %v594_v12 }
  0x28   : > { %268 = vrot.lane.b32.xlu1 %v237_v6, %s593_s26  ;;  %266 = vrot.lane.b32.xlu0 %v236_v7, %s593_s26  ;;  %190 = vst.msk [vmem:[%s676_s4 + $0x80] sm:$0xff] %vm173_vm0, %v594_v12 }
  0x29   : > { %270 = vrot.lane.b32.xlu2 %v238_v8, %s593_s26  ;;  %191 = vst.msk [vmem:[%s676_s4 + $0x88] sm:$0xff] %vm173_vm0, %v594_v12 }
  0x2a   : > { %192 = vst.msk [vmem:[%s676_s4 + $0x90] sm:$0xff] %vm173_vm0, %v594_v12 }
  0x2b   : > { %193 = vst.msk [vmem:[%s676_s4 + $0x98] sm:$0xff] %vm173_vm0, %v594_v12 }
  0x2c   : > { %196 = vst.msk [vmem:[%s676_s4 + $0xb0] sm:$0xff] %vm173_vm0, %v594_v12 }
  0x2d   : > { %197 = vst.msk [vmem:[%s676_s4 + $0xb8] sm:$0xff] %vm173_vm0, %v594_v12 }
  0x2e   : > { %198 = vst.msk [vmem:[%s676_s4 + $0xc0] sm:$0xff] %vm173_vm0, %v594_v12 }
  0x2f   : > { %199 = vst.msk [vmem:[%s676_s4 + $0xc8] sm:$0xff] %vm173_vm0, %v594_v12 }
  0x30   : > { %274 = vrot.lane.b32.xlu1 %v240_v9, %s593_s26  ;;  %272 = vrot.lane.b32.xlu0 %v239_v10, %s593_s26  ;;  %200 = vst.msk [vmem:[%s676_s4 + $0xd0] sm:$0xff] %vm173_vm0, %v594_v12 }
  0x31   : > { %276 = vrot.lane.b32.xlu2 %v241_v11, %s593_s26  ;;  %201 = vst.msk [vmem:[%s676_s4 + $0xd8] sm:$0xff] %vm173_vm0, %v594_v12 }
  0x32   : > { %202 = vst.msk [vmem:[%s676_s4 + $0xe0] sm:$0xff] %vm173_vm0, %v594_v12 }
  0x33   : > { %203 = vst.msk [vmem:[%s676_s4 + $0xe8] sm:$0xff] %vm173_vm0, %v594_v12 }
  0x34   : > { %204 = vst.msk [vmem:[%s676_s4 + $0xf0] sm:$0xff] %vm173_vm0, %v594_v12 }
  0x35   : > { %205 = vst.msk [vmem:[%s676_s4 + $0xf8] sm:$0xff] %vm173_vm0, %v594_v12 }
  0x36   : > { %206 = vst.msk [vmem:[%s676_s4 + $0x100] sm:$0xff] %vm173_vm0, %v594_v12 }
  0x37   : > { %207 = vst.msk [vmem:[%s676_s4 + $0x108] sm:$0xff] %vm173_vm0, %v594_v12 }
  0x38   : > { %330 = vrot.lane.b32.xlu1 %v305_v13, %s595_s5  ;;  %328 = vrot.lane.b32.xlu0 %v304_v14, %s595_s5  ;;  %208 = vst.msk [vmem:[%s676_s4 + $0x110] sm:$0xff] %vm173_vm0, %v594_v12 }
  0x39   : > { %332 = vrot.lane.b32.xlu2 %v306_v15, %s595_s5  ;;  %209 = vst.msk [vmem:[%s676_s4 + $0x118] sm:$0xff] %vm173_vm0, %v594_v12 }
  0x3a   : > { %210 = vst.msk [vmem:[%s676_s4 + $0x120] sm:$0xff] %vm173_vm0, %v594_v12 }
  0x3b   : > { %211 = vst.msk [vmem:[%s676_s4 + $0x128] sm:$0xff] %vm173_vm0, %v594_v12 }
  0x3c   : > { %212 = vst.msk [vmem:[%s676_s4 + $0x130] sm:$0xff] %vm173_vm0, %v594_v12 }
  0x3d   : > { %213 = vst.msk [vmem:[%s676_s4 + $0x138] sm:$0xff] %vm173_vm0, %v594_v12 }
  0x3e   : > { %214 = vst.msk [vmem:[%s676_s4 + $0x140] sm:$0xff] %vm173_vm0, %v594_v12 }
  0x3f   : > { %215 = vst.msk [vmem:[%s676_s4 + $0x148] sm:$0xff] %vm173_vm0, %v594_v12 }
  0x40   : > { %336 = vrot.lane.b32.xlu1 %v308_v16, %s595_s5  ;;  %334 = vrot.lane.b32.xlu0 %v307_v17, %s595_s5  ;;  %216 = vst.msk [vmem:[%s676_s4 + $0x150] sm:$0xff] %vm173_vm0, %v594_v12 }
  0x41   : > { %338 = vrot.lane.b32.xlu2 %v309_v18, %s595_s5  ;;  %217 = vst.msk [vmem:[%s676_s4 + $0x158] sm:$0xff] %vm173_vm0, %v594_v12 }
  0x42   : > { %218 = vst.msk [vmem:[%s676_s4 + $0x160] sm:$0xff] %vm173_vm0, %v594_v12 }
  0x43   : > { %219 = vst.msk [vmem:[%s676_s4 + $0x168] sm:$0xff] %vm173_vm0, %v594_v12 }
  0x44   : > { %220 = vst.msk [vmem:[%s676_s4 + $0x170] sm:$0xff] %vm173_vm0, %v594_v12 }
  0x45   : > { %221 = vst.msk [vmem:[%s676_s4 + $0x178] sm:$0xff] %vm173_vm0, %v594_v12 }
  0x46   : > { %222 = vst.msk [vmem:[%s676_s4 + $0x180] sm:$0xff] %vm173_vm0, %v594_v12 }
  0x47   : > { %223 = vst.msk [vmem:[%s676_s4 + $0x188] sm:$0xff] %vm173_vm0, %v594_v12 }
  0x48   : > { %342 = vrot.lane.b32.xlu1 %v311_v19, %s595_s5  ;;  %340 = vrot.lane.b32.xlu0 %v310_v20, %s595_s5  ;;  %224 = vst.msk [vmem:[%s676_s4 + $0x190] sm:$0xff] %vm173_vm0, %v594_v12 }
  0x49   : > { %344 = vrot.lane.b32.xlu2 %v312_v21, %s595_s5  ;;  %225 = vst.msk [vmem:[%s676_s4 + $0x198] sm:$0xff] %vm173_vm0, %v594_v12 }
  0x4a   : > { %226 = vst.msk [vmem:[%s676_s4 + $0x1a0] sm:$0xff] %vm173_vm0, %v594_v12 }
  0x4b   : > { %227 = vst.msk [vmem:[%s676_s4 + $0x1a8] sm:$0xff] %vm173_vm0, %v594_v12 }
  0x4c   : > { %228 = vst.msk [vmem:[%s676_s4 + $0x1b0] sm:$0xff] %vm173_vm0, %v594_v12 }
  0x4d   : > { %229 = vst.msk [vmem:[%s676_s4 + $0x1b8] sm:$0xff] %vm173_vm0, %v594_v12 }
  0x50   : > { %348 = vrot.lane.b32.xlu1 %v314_v22, %s595_s5  ;;  %346 = vrot.lane.b32.xlu0 %v313_v23, %s595_s5 }
  0x51   : > { %350 = vrot.lane.b32.xlu2 %v315_v24, %s595_s5 }
  0x73   : > { %v263_v25 = vpop.permute.xlu2 %262 }
  0x74   : > { %296 = vst.msk [vmem:[%s676_s4 + $0xa2] sm:$0xff] %vm290_vm1, %v263_v25 }
  0x7b   : > { %v265_v26 = vpop.permute.xlu2 %264 }
  0x7c   : > { %297 = vst.msk [vmem:[%s676_s4 + $0xaa] sm:$0x3f] %vm293_vm2, %v265_v26 }
  0x83   : > { %v271_v27 = vpop.permute.xlu2 %270 }
  0x84   : > { %300 = vst.msk [vmem:[%s676_s4 + $0x11a] sm:$0x3f] %vm293_vm2, %v271_v27 }
  0x8a   : > { %v259_v28 = vpop.permute.xlu1 %258  ;;  %v255_v29 = vpop.permute.xlu0 %254 }
  0x8b   : > { %294 = vst.msk [vmem:[%s676_s4 + $0x3a] sm:$0x3f] %vm293_vm2, %v259_v28  ;;  %v277_v30 = vpop.permute.xlu2 %276 }
  0x8c   : > { %291 = vst.msk [vmem:[%s676_s4 + $0x2a] sm:$0xff] %vm290_vm1, %v255_v29 }
  0x8d   : > { %303 = vst.msk [vmem:[%s676_s4 + $0x18a] sm:$0x3f] %vm293_vm2, %v277_v30 }
  0x92   : > { %v261_v31 = vpop.permute.xlu1 %260  ;;  %v257_v32 = vpop.permute.xlu0 %256 }
  0x93   : > { %295 = vst.msk [vmem:[%s676_s4 + $0x9a] sm:$0xff] %vm290_vm1, %v261_v31  ;;  %v333_v33 = vpop.permute.xlu2 %332 }
  0x94   : > { %292 = vst.msk [vmem:[%s676_s4 + $0x32] sm:$0xff] %vm290_vm1, %v257_v32 }
  0x95   : > { %368 = vst.msk [vmem:[%s676_s4 + $0x3a] sm:$0x3f] %vm367_vm3, %v333_v33 }
  0x9a   : > { %v269_v34 = vpop.permute.xlu1 %268  ;;  %v267_v35 = vpop.permute.xlu0 %266 }
  0x9b   : > { %299 = vst.msk [vmem:[%s676_s4 + $0x112] sm:$0xff] %vm290_vm1, %v269_v34  ;;  %v339_v36 = vpop.permute.xlu2 %338 }
  0x9c   : > { %298 = vst.msk [vmem:[%s676_s4 + $0x10a] sm:$0xff] %vm290_vm1, %v267_v35 }
  0x9d   : > { %371 = vst.msk [vmem:[%s676_s4 + $0xaa] sm:$0x3f] %vm367_vm3, %v339_v36 }
  0xa2   : > { %v275_v37 = vpop.permute.xlu1 %274  ;;  %v273_v38 = vpop.permute.xlu0 %272 }
  0xa3   : > { %302 = vst.msk [vmem:[%s676_s4 + $0x182] sm:$0xff] %vm290_vm1, %v275_v37  ;;  %v345_v39 = vpop.permute.xlu2 %344 }
  0xa4   : > { %301 = vst.msk [vmem:[%s676_s4 + $0x17a] sm:$0xff] %vm290_vm1, %v273_v38 }
  0xa5   : > { %374 = vst.msk [vmem:[%s676_s4 + $0x11a] sm:$0x3f] %vm367_vm3, %v345_v39 }
  0xaa   : > { %v331_v40 = vpop.permute.xlu1 %330  ;;  %v329_v41 = vpop.permute.xlu0 %328 }
  0xab   : > { %366 = vst.msk [vmem:[%s676_s4 + $0x32] sm:$0xff] %vm364_vm4, %v331_v40  ;;  %v351_v42 = vpop.permute.xlu2 %350 }
  0xac   : > { %365 = vst.msk [vmem:[%s676_s4 + $0x2a] sm:$0xff] %vm364_vm4, %v329_v41 }
  0xad   : > { %377 = vst.msk [vmem:[%s676_s4 + $0x18a] sm:$0x3f] %vm367_vm3, %v351_v42 }
  0xb2   : > { %v337_v43 = vpop.permute.xlu1 %336  ;;  %v335_v44 = vpop.permute.xlu0 %334 }
  0xb3   : > { %370 = vst.msk [vmem:[%s676_s4 + $0xa2] sm:$0xff] %vm364_vm4, %v337_v43 }
  0xb4   : > { %369 = vst.msk [vmem:[%s676_s4 + $0x9a] sm:$0xff] %vm364_vm4, %v335_v44 }
  0xba   : > { %v343_v45 = vpop.permute.xlu1 %342  ;;  %v341_v46 = vpop.permute.xlu0 %340 }
  0xbb   : > { %373 = vst.msk [vmem:[%s676_s4 + $0x112] sm:$0xff] %vm364_vm4, %v343_v45 }
  0xbc   : > { %372 = vst.msk [vmem:[%s676_s4 + $0x10a] sm:$0xff] %vm364_vm4, %v341_v46 }
  0xc2   : > { %v349_v47 = vpop.permute.xlu1 %348  ;;  %v347_v48 = vpop.permute.xlu0 %346 }
  0xc3   : > { %376 = vst.msk [vmem:[%s676_s4 + $0x182] sm:$0xff] %vm364_vm4, %v349_v47 }
  0xc4   : > { %375 = vst.msk [vmem:[%s676_s4 + $0x17a] sm:$0xff] %vm364_vm4, %v347_v48 }
  0xc5   : > { %556 = shalt.err (!%p553_p3)
}
  0xc6   : > { %s596_s27 = smov 128   ;;  %s597_s29 = smov 8  }
  0xc7   : > { %485 = dma.vmem_to_hbm [thread:$0]  (%p651_p5), %s393_s16, 7168, %s395_s17, %s379_s13, %s596_s27, %s596_s27, %s597_s29  }
  0xc8 PF: > { %p491_p4 = scmp.ge.s32.totalorder %s591_s12, 2  ;;  %s409_s30 = sand.u32 1, %s579_s9  }
  0xc9   : > { %s410_s3 = scalar_lea.sflag [#allocation3], %s409_s30 }
  0xca   : > { %p488_p7 = pnand %p491_p4, %p655_p6 }
  0xcc   : > { %p489_p8 = pneg %p488_p7 }
  0xce   : > { %574 = dma.done.wait (%p489_p8), %s410_s3, 7168  }
  0xcf   : > { %576 = vsyncadd (%p489_p8), %s410_s3, 4294960128  ;;  %p12_p9 = scmp.ge.s32.totalorder %s638_s15, 4   ;;  %s953_s9 = smov %s583_s10 }
  0xd0   : > { %s954_s10 = smov %s587_s11  ;;  %s955_s11 = smov %s649_s18 }
  0xd1   : > { %s956_s12 = smov %s638_s15  ;;  %14 = sbr.rel (!%p12_p9) target bundleno = 3 (0x3), region = 66 }
  0xd6   :  { %416 = vsyncpa [#allocation3], 1 }
  0xd7   :  { %418 = vsyncpa [#allocation3 + $0x1], 1 }

</bundles_post_ra>
